<compile_context>
chip_gen: v7x
topology: tpu7x:2x2x1
jax: 0.10.0
libtpu: 0.0.40
codegen_flags: <defaults>
</compile_context>

<pallas_src>
import jax
import jax.numpy as jnp
from jax import lax
from jax.experimental import pallas as pl
from jax.experimental.pallas import tpu as pltpu


# ---------------------------------------------------------------------------
# Fused kernel: per-tile CE partial sum + softmax max-prob + argmax.
# ---------------------------------------------------------------------------
def _classifier_head_kernel(logits_ref, labels_ref, loss_ref, maxprob_ref, pred_ref):
    x = logits_ref[...].astype(jnp.float32)            # (TB, C)  in-kernel upcast
    labels = labels_ref[0]                              # (TB, 1)  int32, -1 == padding
    c = x.shape[1]

    # numerically-stable softmax stats along the class (lane) axis
    m = jnp.max(x, axis=-1, keepdims=True)              # (TB, 1)
    shifted = x - m
    e = jnp.exp(shifted)
    s = jnp.sum(e, axis=-1, keepdims=True)               # (TB, 1)

    # max softmax prob without materializing probs: max_c exp(x-m)/s = exp(0)/s = 1/s
    maxprob_ref[0] = pl.reciprocal(s, approx=True)        # EUP, frees the VALU divide

    # argmax along lanes (first occurrence on ties), same trick as torch.max(..., 1)
    cls = lax.broadcasted_iota(jnp.int32, x.shape, 1)      # (TB, C)
    cls_f = cls.astype(jnp.float32)
    first_max = jnp.min(jnp.where(x >= m, cls_f, jnp.float32(c)),
                        axis=-1, keepdims=True)            # (TB, 1)
    pred_ref[0] = first_max.astype(jnp.int32)

    # cross-entropy partial sum (one-hot select instead of dynamic gather)
    lse = jnp.log(s)                                        # (TB, 1)
    picked = jnp.sum(jnp.where(cls == labels, shifted, 0.0),
                     axis=-1, keepdims=True)                # (TB, 1)
    nll = jnp.where(labels >= 0, lse - picked, 0.0)         # mask padded rows
    loss_ref[0] = jnp.sum(nll, keepdims=True)                # (1, 1) partial sum


# ---------------------------------------------------------------------------
# Wrapper: batch tiling, padding, mean reduction.
# ---------------------------------------------------------------------------
def _choose_row_tile(batch, num_classes, itemsize, max_rows_per_tile):
    """Pick a row-tile TB (multiple of 8) whose double-buffered logits block stays
    well inside the v7x scoped-VMEM budget (conservative for v5e/v6e too)."""
    budget = 12 * 1024 * 1024                    # ~12 MiB for 2-deep buffered input
    per_row = 2 * num_classes * max(int(itemsize), 4)
    tb = max(8, min(int(max_rows_per_tile), budget // per_row))
    tb -= tb % 8
    tb = max(tb, 8)
    b8 = ((batch + 7) // 8) * 8                   # never tile beyond the padded batch
    return min(tb, b8)


def classifier_metrics(logits, labels, *, max_rows_per_tile=1024):
    """Fused equivalent of:
         loss     = nn.CrossEntropyLoss()(logits, labels)          (mean reduction)
         max_prob = torch.max(nn.Softmax(dim=1)(logits), dim=1).values
         pred     = torch.max(logits, 1).indices
       Returns (loss, max_prob, pred). Full softmax probs are intentionally not
       materialized (none of the module's code paths consume them).
    """
    B, C = logits.shape
    labels = labels.astype(jnp.int32)

    tb = _choose_row_tile(B, C, jnp.dtype(logits.dtype).itemsize, max_rows_per_tile)
    num_tiles = -(-B // tb)
    Bp = num_tiles * tb
    if Bp != B:
        logits = jnp.pad(logits, ((0, Bp - B), (0, 0)))
        labels = jnp.pad(labels, (0, Bp - B), constant_values=-1)
    labels3 = labels.reshape(num_tiles, tb, 1)

    loss_part, maxprob, pred = pl.pallas_call(
        _classifier_head_kernel,
        out_shape=(
            jax.ShapeDtypeStruct((num_tiles, 1, 1), jnp.float32),   # per-tile NLL sums
            jax.ShapeDtypeStruct((num_tiles, tb, 1), jnp.float32),  # max softmax prob
            jax.ShapeDtypeStruct((num_tiles, tb, 1), jnp.int32),    # argmax prediction
        ),
        grid=(num_tiles,),
        in_specs=[
            pl.BlockSpec((tb, C), lambda i: (i, 0)),        # logits tile (native dtype)
            pl.BlockSpec((1, tb, 1), lambda i: (i, 0, 0)),  # labels tile
        ],
        out_specs=(
            pl.BlockSpec((1, 1, 1), lambda i: (i, 0, 0)),
            pl.BlockSpec((1, tb, 1), lambda i: (i, 0, 0)),
            pl.BlockSpec((1, tb, 1), lambda i: (i, 0, 0)),
        ),
        compiler_params=pltpu.CompilerParams(
            dimension_semantics=("parallel",),              # megacore-shard the batch
            vmem_limit_bytes=32 * 1024 * 1024,
        ),
    )(logits, labels3)

    loss = jnp.sum(loss_part) / jnp.float32(B)              # mean over the TRUE batch
    max_prob = maxprob.reshape(Bp)[:B]
    predicted = pred.reshape(Bp)[:B]
    return loss, max_prob, predicted


def cross_entropy_loss(logits, labels, **kw):
    """self.criterion(outputs, labels) with default reduction='mean'."""
    loss, _, _ = classifier_metrics(logits, labels, **kw)
    return loss


def classifier_head(logits, **kw):
    """compute_accuracy(_with_cos) head: returns (max_prob, predicted_class)."""
    dummy = jnp.zeros((logits.shape[0],), jnp.int32)
    _, max_prob, pred = classifier_metrics(logits, dummy, **kw)
    return max_prob, pred


if __name__ == "__main__":
    key = jax.random.PRNGKey(0)
    k1, k2, k3, k4 = jax.random.split(key, 4)

    # (B, C, row-tile cap): first case exercises a 3-step pipelined grid,
    # second exercises batch padding with masked rows.
    cases = [((24, 16, 8), (k1, k2)), ((13, 16, 1024), (k3, k4))]

    for (B, C, cap), (kl, kb) in cases:
        logits = jax.random.normal(kl, (B, C), dtype=jnp.float32)
        labels = jax.random.randint(kb, (B,), 0, C, dtype=jnp.int32)

        loss, max_prob, pred = classifier_metrics(logits, labels, max_rows_per_tile=cap)
        jax.block_until_ready((loss, max_prob, pred))

        # Silent correctness checks against pure-JAX references.
        logp = jax.nn.log_softmax(logits, axis=1)
        ref_loss = -jnp.mean(logp[jnp.arange(B), labels])
        ref_probs = jax.nn.softmax(logits, axis=1)
        assert jnp.allclose(loss, ref_loss, atol=1e-4), (loss, ref_loss)
        assert jnp.allclose(max_prob, jnp.max(ref_probs, axis=1), atol=5e-3)
        assert jnp.all(pred == jnp.argmax(logits, axis=1))

    print("KERNEL_OK")
</pallas_src>

<mosaic_0001>
module attributes {stable_mosaic.version = 11 : i64} {
  func.func @_classifier_head_kernel(%arg0: i32, %arg1: memref<8x16xf32, #tpu.memory_space<vmem>>, %arg2: memref<1x8x1xi32, #tpu.memory_space<vmem>>, %arg3: memref<1x1x1xf32, #tpu.memory_space<vmem>>, %arg4: memref<1x8x1xf32, #tpu.memory_space<vmem>>, %arg5: memref<1x8x1xi32, #tpu.memory_space<vmem>>) attributes {dimension_semantics = [#tpu.dimension_semantics<parallel>], iteration_bounds = array<i64: 3>, scalar_prefetch = 0 : i64, scratch_operands = 0 : i64, tpu.core_type = #tpu.core_type<tc>, window_params = [{transform_indices = @transform_0, window_bounds = array<i64: 8, 16>}, {transform_indices = @transform_1, window_bounds = array<i64: 1, 8, 1>}, {transform_indices = @transform_2, window_bounds = array<i64: 1, 1, 1>}, {transform_indices = @transform_3, window_bounds = array<i64: 1, 8, 1>}, {transform_indices = @transform_4, window_bounds = array<i64: 1, 8, 1>}]} {
    %c0 = arith.constant 0 : index
    %c0_0 = arith.constant 0 : index
    %0 = vector.load %arg1[%c0, %c0_0] : memref<8x16xf32, #tpu.memory_space<vmem>>, vector<8x16xf32>
    %c0_1 = arith.constant 0 : index
    %c0_2 = arith.constant 0 : index
    %c0_3 = arith.constant 0 : index
    %1 = vector.load %arg2[%c0_1, %c0_2, %c0_3] : memref<1x8x1xi32, #tpu.memory_space<vmem>>, vector<1x8x1xi32>
    %2 = vector.shape_cast %1 : vector<1x8x1xi32> to vector<8x1xi32>
    %cst = arith.constant dense<0xFF800000> : vector<8xf32>
    %3 = vector.multi_reduction <maximumf>, %0, %cst [1] : vector<8x16xf32> to vector<8xf32>
    %4 = vector.shape_cast %3 : vector<8xf32> to vector<8x1xf32>
    %5 = vector.broadcast %4 : vector<8x1xf32> to vector<8x16xf32>
    %6 = arith.subf %0, %5 : vector<8x16xf32>
    %7 = math.exp %6 : vector<8x16xf32>
    %cst_4 = arith.constant dense<0.000000e+00> : vector<8xf32>
    %8 = vector.multi_reduction <add>, %7, %cst_4 [1] : vector<8x16xf32> to vector<8xf32>
    %9 = vector.shape_cast %8 : vector<8xf32> to vector<8x1xf32>
    %10 = tpu.reciprocal %9 {approx = true} : vector<8x1xf32> -> vector<8x1xf32>
    %c0_5 = arith.constant 0 : index
    %c0_6 = arith.constant 0 : index
    %c0_7 = arith.constant 0 : index
    %11 = vector.load %arg4[%c0_5, %c0_6, %c0_7] : memref<1x8x1xf32, #tpu.memory_space<vmem>>, vector<1x8x1xf32>
    %12 = vector.shape_cast %11 : vector<1x8x1xf32> to vector<8x1xf32>
    %13 = vector.shape_cast %10 : vector<8x1xf32> to vector<1x8x1xf32>
    tpu.vector_store %arg4[%c0_5, %c0_6, %c0_7], %13 {strides = array<i32>} : memref<1x8x1xf32, #tpu.memory_space<vmem>>, vector<1x8x1xf32>,
    %14 = tpu.iota {dimensions = array<i32: 1>} : vector<8x16xi32>
    %15 = arith.sitofp %14 : vector<8x16xi32> to vector<8x16xf32>
    %16 = vector.broadcast %4 : vector<8x1xf32> to vector<8x16xf32>
    %17 = arith.cmpf oge, %0, %16 : vector<8x16xf32>
    %cst_8 = arith.constant 1.600000e+01 : f32
    %18 = vector.broadcast %cst_8 : f32 to vector<8x16xf32>
    %19 = arith.select %17, %15, %18 : vector<8x16xi1>, vector<8x16xf32>
    %cst_9 = arith.constant dense<0x7F800000> : vector<8xf32>
    %20 = vector.multi_reduction <minimumf>, %19, %cst_9 [1] : vector<8x16xf32> to vector<8xf32>
    %21 = vector.shape_cast %20 : vector<8xf32> to vector<8x1xf32>
    %22 = arith.fptosi %21 : vector<8x1xf32> to vector<8x1xi32>
    %c0_10 = arith.constant 0 : index
    %c0_11 = arith.constant 0 : index
    %c0_12 = arith.constant 0 : index
    %23 = vector.load %arg5[%c0_10, %c0_11, %c0_12] : memref<1x8x1xi32, #tpu.memory_space<vmem>>, vector<1x8x1xi32>
    %24 = vector.shape_cast %23 : vector<1x8x1xi32> to vector<8x1xi32>
    %25 = vector.shape_cast %22 : vector<8x1xi32> to vector<1x8x1xi32>
    tpu.vector_store %arg5[%c0_10, %c0_11, %c0_12], %25 {strides = array<i32>} : memref<1x8x1xi32, #tpu.memory_space<vmem>>, vector<1x8x1xi32>,
    %26 = math.log %9 : vector<8x1xf32>
    %27 = vector.broadcast %2 : vector<8x1xi32> to vector<8x16xi32>
    %28 = arith.cmpi eq, %14, %27 : vector<8x16xi32>
    %cst_13 = arith.constant 0.000000e+00 : f32
    %29 = vector.broadcast %cst_13 : f32 to vector<8x16xf32>
    %30 = arith.select %28, %6, %29 : vector<8x16xi1>, vector<8x16xf32>
    %cst_14 = arith.constant dense<0.000000e+00> : vector<8xf32>
    %31 = vector.multi_reduction <add>, %30, %cst_14 [1] : vector<8x16xf32> to vector<8xf32>
    %32 = vector.shape_cast %31 : vector<8xf32> to vector<8x1xf32>
    %c0_i32 = arith.constant 0 : i32
    %33 = vector.broadcast %c0_i32 : i32 to vector<8x1xi32>
    %34 = arith.cmpi sge, %2, %33 : vector<8x1xi32>
    %35 = arith.subf %26, %32 : vector<8x1xf32>
    %cst_15 = arith.constant 0.000000e+00 : f32
    %36 = vector.broadcast %cst_15 : f32 to vector<8x1xf32>
    %37 = arith.select %34, %35, %36 : vector<8x1xi1>, vector<8x1xf32>
    %38 = vector.shape_cast %37 : vector<8x1xf32> to vector<1x8x1xf32>
    %cst_16 = arith.constant dense<0.000000e+00> : vector<1xf32>
    %39 = vector.multi_reduction <add>, %38, %cst_16 [1, 2] : vector<1x8x1xf32> to vector<1xf32>
    %40 = vector.shape_cast %39 : vector<1xf32> to vector<1x1x1xf32>
    %41 = vector.extract %40[0, 0, 0] : f32 from vector<1x1x1xf32>
    %42 = vector.broadcast %41 : f32 to vector<1x1xf32>
    %c0_17 = arith.constant 0 : index
    %c0_18 = arith.constant 0 : index
    %c0_19 = arith.constant 0 : index
    %43 = vector.load %arg3[%c0_17, %c0_18, %c0_19] : memref<1x1x1xf32, #tpu.memory_space<vmem>>, vector<1x1x1xf32>
    %44 = vector.shape_cast %43 : vector<1x1x1xf32> to vector<1x1xf32>
    %45 = vector.shape_cast %42 : vector<1x1xf32> to vector<1x1x1xf32>
    tpu.vector_store %arg3[%c0_17, %c0_18, %c0_19], %45 {strides = array<i32>} : memref<1x1x1xf32, #tpu.memory_space<vmem>>, vector<1x1x1xf32>,
    return
  }
  func.func @transform_0(%arg0: i32) -> (i32, i32) {
    %c0_i32 = arith.constant 0 : i32
    %c0_i32_0 = arith.constant 0 : i32
    return %arg0, %c0_i32 : i32, i32
  }
  func.func @transform_1(%arg0: i32) -> (i32, i32, i32) {
    %c0_i32 = arith.constant 0 : i32
    %c0_i32_0 = arith.constant 0 : i32
    %c0_i32_1 = arith.constant 0 : i32
    return %arg0, %c0_i32, %c0_i32_0 : i32, i32, i32
  }
  func.func @transform_2(%arg0: i32) -> (i32, i32, i32) {
    %c0_i32 = arith.constant 0 : i32
    %c0_i32_0 = arith.constant 0 : i32
    %c0_i32_1 = arith.constant 0 : i32
    return %arg0, %c0_i32, %c0_i32_0 : i32, i32, i32
  }
  func.func @transform_3(%arg0: i32) -> (i32, i32, i32) {
    %c0_i32 = arith.constant 0 : i32
    %c0_i32_0 = arith.constant 0 : i32
    %c0_i32_1 = arith.constant 0 : i32
    return %arg0, %c0_i32, %c0_i32_0 : i32, i32, i32
  }
  func.func @transform_4(%arg0: i32) -> (i32, i32, i32) {
    %c0_i32 = arith.constant 0 : i32
    %c0_i32_0 = arith.constant 0 : i32
    %c0_i32_1 = arith.constant 0 : i32
    return %arg0, %c0_i32, %c0_i32_0 : i32, i32, i32
  }
}

</mosaic_0001>

<bundles_post_ra>
// kernel: tpu_custom_call.1
= control target key start
LH: loop header
LB: loop body
LE: loop exit
PB: predicated region body
PF: predicated region fallthrough
CT: control target
= control target key end

     0   :  { %s466_s15 = smov 0   ;;  %s509_s0 = inlined_call_operand.vmem [shape: f32[24,16], index: 0, kind: input, shape index: {}]   ;;  %s510_s1 = inlined_call_operand.vmem [shape: s32[3,8,1], index: 1, kind: input, shape index: {}]   ;;  %s511_s2 = inlined_call_operand.vmem [shape: f32[3,1,1], index: 2, kind: output, shape index: {0}]   ;;  %s512_s3 = inlined_call_operand.vmem [shape: f32[3,8,1], index: 3, kind: output, shape index: {1}]   ;;  %s513_s4 = inlined_call_operand.vmem [shape: s32[3,8,1], index: 4, kind: output, shape index: {2}]  }
   0x1 LB: > { %s401_s16 = sadd.s32 4294967295, %s438_s15   ;;  %p405_p0 = scmp.ge.s32.totalorder %s438_s15, 1  ;;  %s438_s15 = sphi %s466_s15, %s15_s15  }
   0x2   : > { %p175_p1 = scmp.lt.s32.totalorder %s438_s15, 4 }
   0x4   : > { %p176_p2 = pnand %p405_p0, %p175_p1 }
   0x5   : > { %p210_p3 = scmp.lt.s32.totalorder (!%p176_p2), %s401_s16, 2  ;;  %v440_v0 = vmov (!%p176_p2), 0   ;;  %vm231_vm0 = vcmask (!%p176_p2), 130048   ;;  %v244_v7 = vlaneseq (!%p176_p2)  ;;  %vm242_vm2 = vcmask (!%p176_p2), 7168  }
   0x6   : > { %179 = sbr.rel (%p176_p2) target bundleno = 542 (0x21e), region = 28  ;;  %425 = vset.pattern.permute.xlu0 (!%p176_p2), %v440_v0  ;;  %vm278_vm5 = vcmask (!%p176_p2), 0  }
   0x7   : > { %v245_v9 = vand.u32 (!%p176_p2), 127, %v244_v7 }
   0x9   : > { %v246_v20 = vcvt.s32.f32 (!%p176_p2), %v245_v9 }
   0xd   : > { %s515_s16 = smov (!%p210_p3, %s401_s16), 2 }
   0xe   : > { %s477_s17 = sshll.u32 %s515_s16, 3  ;;  %s220_s6 = scalar_lea.vmem %s511_s2, %s515_s16 }
   0xf   : > { %s213_s20 = scalar_lea.vmem %s509_s0, %s477_s17  ;;  %s217_s23 = scalar_lea.vmem %s510_s1, %s477_s17 }
  0x10   : > { %v229_v1 = vld [vmem:[%s213_s20] sm:$0xff]  ;;  %s224_s26 = scalar_lea.vmem %s512_s3, %s477_s17  ;;  %s228_s29 = scalar_lea.vmem %s513_s4, %s477_s17 }
  0x11   : > { %v232_v2 = vsel %vm231_vm0, %v229_v1, -inf  ;;  %v230_v3 = vld [vmem:[%s217_s23] sm:$0xff] }
  0x12   : > { %233 = vmax.xlane.f32.xlu0 %v232_v2  ;;  %vm264_vm3 = vcmp.ge.s32.totalorder %v230_v3, 0 }
  0x28   : > { %257 = vperm.xlu0 %425, %v230_v3  }
  0x9f   : > { %v234_v4 = vpop.xlane.xlu0 %233 }
  0xa0   : > { %v235_v5 = vsub.f32 %v229_v1, %v234_v4  ;;  %vm247_vm4 = vcmp.ge.f32.partialorder %v229_v1, %v234_v4 }
  0xa1   : > { %v248_v23 = vsel %vm247_vm4, %v246_v20, 16.0 }
  0xa2   : > { %v236_v6 = vmul.f32 1.442695, %v235_v5  ;;  %v249_v24 = vsel %vm231_vm0, %v248_v23, inf }
  0xa4   : > { %426 = vpow2.f32 %v236_v6 }
  0xa7   : > { %v258_v8 = vpop.permute.xlu0 %257 }
  0xa8   : > { %vm259_vm1 = vcmp.eq.s32.totalorder %v245_v9, %v258_v8 }
  0xa9   : > { %v260_v12 = vsel %vm259_vm1, %v235_v5, 0.0 }
  0xaa   : > { %v261_v13 = vsel %vm231_vm0, %v260_v12, 0.0 }
  0xae   : > { %v427_v10 = vpop.eup %426 }
  0xaf   : > { %v238_v11 = vsel %vm231_vm0, %v427_v10, 0.0 }
  0xb0   : > { %239 = vadd.xlane.f32.xlu1 %v238_v11 }
  0xb4   : > { %262 = vadd.xlane.f32.xlu1 %v261_v13 }
 0x13d   : > { %v240_v14 = vpop.xlane.xlu1 %239 }
 0x13e   : > { %428 = vrcp.f32 %v240_v14 }
 0x13f   : > { %430 = vlog2.f32 %v240_v14 }
 0x141   : > { %v263_v18 = vpop.xlane.xlu1 %262 }
 0x148   : > { %v429_v15 = vpop.eup %428 }
 0x149   : > { %v431_v16 = vpop.eup %430  ;;  %243 = vst.msk [vmem:[%s224_s26] sm:$0xff] %vm242_vm2, %v429_v15 }
 0x14a   : > { %v255_v17 = vmul.f32 0.6931472, %v431_v16 }
 0x14c   : > { %v265_v19 = vsub.f32 %v255_v17, %v263_v18 }
 0x14e   : > { %v266_v21 = vsel %vm264_vm3, %v265_v19, 0.0 }
 0x14f   : > { %v267_v22 = vsel %vm242_vm2, %v266_v21, 0.0 }
 0x150   : > { %268 = vadd.xlane.f32.xlu1 %v267_v22 }
 0x154   : > { %250 = vmin.xlane.f32.xlu1 %v249_v24 }
 0x1dd   : > { %v269_v25 = vpop.xlane.xlu1 %268 }
 0x1de   : > { %v270_v26 = vrot.slane %v269_v25, 4 }
 0x1e0   : > { %v271_v27 = vadd.f32 %v270_v26, %v269_v25 }
 0x1e1   : > { %v251_v28 = vpop.xlane.xlu1 %250 }
 0x1e2   : > { %v272_v29 = vrot.slane %v271_v27, 2  ;;  %v412_v30 = vtrunc.f32 %v251_v28 }
 0x1e4   : > { %v413_v31 = vcvt.f32.s32 %v412_v30  ;;  %v273_v32 = vadd.f32 %v272_v29, %v271_v27 }
 0x1e6   : > { %253 = vst.msk [vmem:[%s228_s29] sm:$0xff] %vm242_vm2, %v413_v31  ;;  %v274_v33 = vrot.slane %v273_v32, 1 }
 0x1e8   : > { %v275_v34 = vadd.f32 %v274_v33, %v273_v32 }
 0x1ea   : > { %414 = vpush %v275_v34 }
 0x21b   : > { %s415_s7 = spop %414 }
 0x21c   : > { %v277_v35 = vstv %s415_s7 }
 0x21d   : > { %279 = vst.msk [vmem:[%s220_s6] sm:$0x1] %vm278_vm5, %v277_v35 }
 0x21e PF: > { %s15_s15 = sadd.s32 1, %s438_s15  }
 0x21f   : > { %p12_p4 = scmp.ge.s32.totalorder %s15_s15, 5  }
 0x221   :  { %14 = sbr.rel (!%p12_p4) target bundleno = 1 (0x1), region = 85 }

</bundles_post_ra>
